<compile_context>
chip_gen: v7x
topology: tpu7x:2x2x1
jax: 0.10.0
libtpu: 0.0.40
codegen_flags: <defaults>
</compile_context>

<pallas_src>
import functools
import math

import jax
import jax.numpy as jnp
from jax.experimental import pallas as pl
from jax.experimental.pallas import tpu as pltpu


# ---------------------------------------------------------------------------
# Kernels
# ---------------------------------------------------------------------------

def _lambda_train_kernel(x_ref, w_ref, b_ref, eps_ref, out_ref, *, latent):
    """One batch tile: fused [mean|logvar] matmul + reparameterized sample.

    out_ref is a lane-dense (tile_b, 3L) slab laid out as [mean | logvar | sample].
    """
    x = x_ref[...]                                                  # (tb, H)

    # Single fused MXU call: (tb, H) @ (H, 2L) + (1, 2L)  ->  [mean | logvar]
    ml = jnp.dot(x, w_ref[...], preferred_element_type=jnp.float32) + b_ref[...]

    mean = ml[:, :latent]                                           # (tb, L)
    logvar = ml[:, latent:]                                         # (tb, L)

    # f32 epilogue (EUP exp + VPU mul/add); cast only at the store.
    std = jnp.exp(0.5 * logvar)
    sample = eps_ref[...] * std + mean                              # (tb, L)

    # Single fused output buffer: [mean | logvar] then [sample].
    out_ref[:, : 2 * latent] = ml.astype(out_ref.dtype)
    out_ref[:, 2 * latent:] = sample.astype(out_ref.dtype)


def _lambda_eval_kernel(x_ref, w_ref, b_ref, out_ref):
    """Eval path: only the mean linear. No eps, no exp, no extra writeback."""
    x = x_ref[...]                                                  # (tb, H)
    mean = jnp.dot(x, w_ref[...], preferred_element_type=jnp.float32) + b_ref[...]
    out_ref[...] = mean.astype(out_ref.dtype)


# ---------------------------------------------------------------------------
# Wrapper
# ---------------------------------------------------------------------------

def _pick_tile_b(batch):
    """Multiple-of-8 batch tile that divides B, preferring a multi-step grid."""
    for cand in (1024, 512, 256, 128, 64, 32, 16, 8):
        if batch % cand == 0 and batch // cand >= 2:
            return cand
    return batch


def _vmem_limit_bytes(tile_b, hidden, extra_in_cols, out_cols, w_cols):
    """Conservative per-step VMEM budget (f32), with headroom, clamped."""
    f32 = 4
    per_step = tile_b * (hidden + extra_in_cols + out_cols) * f32   # x, eps, out
    resident = (hidden * w_cols + w_cols) * f32                     # W, b
    est = 2 * per_step + 2 * resident                               # double-buffered
    return int(min(max(4 * est, 32 << 20), 96 << 20))


def lambda_forward(cell_output, params, *, training, eps=None, tile_b=None):
    """Pallas-backed forward pass of the Lambda module.

    cell_output: (B, H) float32
    params: dict with 'wm' (H, L), 'bm' (1, L), 'wv' (H, L), 'bv' (1, L)
    eps:    (B, L) float32 standard-normal noise (required when training)

    Returns (sample, mean, logvar) when training, else mean.
    """
    B, H = cell_output.shape
    L = params["wm"].shape[1]

    if tile_b is None:
        tile_b = _pick_tile_b(B)
    assert B % tile_b == 0, "tile_b must divide the batch"
    assert tile_b % 8 == 0 or tile_b == B, "tile_b should be a multiple of 8"
    grid = (B // tile_b,)

    if not training:
        vmem_limit = _vmem_limit_bytes(tile_b, H, 0, L, L)
        mean = pl.pallas_call(
            _lambda_eval_kernel,
            out_shape=jax.ShapeDtypeStruct((B, L), jnp.float32),
            grid_spec=pltpu.PrefetchScalarGridSpec(
                num_scalar_prefetch=0,
                grid=grid,
                in_specs=[
                    pl.BlockSpec((tile_b, H), lambda i: (i, 0)),   # x tile
                    pl.BlockSpec((H, L), lambda i: (0, 0)),        # W_mean (resident)
                    pl.BlockSpec((1, L), lambda i: (0, 0)),        # b_mean
                ],
                out_specs=pl.BlockSpec((tile_b, L), lambda i: (i, 0)),
            ),
            compiler_params=pltpu.CompilerParams(
                dimension_semantics=("parallel",),
                vmem_limit_bytes=vmem_limit),
        )(cell_output, params["wm"], params["bm"])
        return mean

    if eps is None:
        raise ValueError("training=True requires eps of shape (B, L)")

    # Fuse the two linears: one (H, 2L) weight, one (1, 2L) bias.
    w_fused = jnp.concatenate([params["wm"], params["wv"]], axis=1)   # (H, 2L)
    b_fused = jnp.concatenate([params["bm"], params["bv"]], axis=1)   # (1, 2L)

    vmem_limit = _vmem_limit_bytes(tile_b, H, L, 3 * L, 2 * L)
    # NOTE: if VMEM is tight (large H*L on v7x), the constant-index weight/bias
    # specs could use pipeline_mode=pl.Buffered(1) to drop their second buffer.
    out = pl.pallas_call(
        functools.partial(_lambda_train_kernel, latent=L),
        out_shape=jax.ShapeDtypeStruct((B, 3 * L), jnp.float32),
        grid_spec=pltpu.PrefetchScalarGridSpec(
            num_scalar_prefetch=0,
            grid=grid,
            in_specs=[
                pl.BlockSpec((tile_b, H), lambda i: (i, 0)),       # x tile
                pl.BlockSpec((H, 2 * L), lambda i: (0, 0)),        # fused W (resident)
                pl.BlockSpec((1, 2 * L), lambda i: (0, 0)),        # fused b
                pl.BlockSpec((tile_b, L), lambda i: (i, 0)),       # eps tile
            ],
            out_specs=pl.BlockSpec((tile_b, 3 * L), lambda i: (i, 0)),
        ),
        compiler_params=pltpu.CompilerParams(
            dimension_semantics=("parallel",),
            vmem_limit_bytes=vmem_limit),
    )(cell_output, w_fused, b_fused, eps)

    mean = out[:, :L]
    logvar = out[:, L:2 * L]
    sample = out[:, 2 * L:]
    return sample, mean, logvar


# ---------------------------------------------------------------------------
# Parameter init (matches nn.Linear + xavier_uniform_ on weights)
# ---------------------------------------------------------------------------

def init_lambda_params(key, hidden_size, latent_length):
    k1, k2, k3, k4 = jax.random.split(key, 4)
    # xavier_uniform: U(-a, a), a = sqrt(6 / (fan_in + fan_out))
    a = math.sqrt(6.0 / (hidden_size + latent_length))
    wm = jax.random.uniform(k1, (hidden_size, latent_length),
                            jnp.float32, -a, a)          # stored as W^T
    wv = jax.random.uniform(k2, (hidden_size, latent_length),
                            jnp.float32, -a, a)
    # nn.Linear default bias init: U(-1/sqrt(fan_in), 1/sqrt(fan_in))
    b_bound = 1.0 / math.sqrt(hidden_size)
    bm = jax.random.uniform(k3, (1, latent_length), jnp.float32, -b_bound, b_bound)
    bv = jax.random.uniform(k4, (1, latent_length), jnp.float32, -b_bound, b_bound)
    return {"wm": wm, "bm": bm, "wv": wv, "bv": bv}


if __name__ == "__main__":
    key = jax.random.PRNGKey(0)
    k_param, k_x, k_eps = jax.random.split(key, 3)

    batch = 8
    hidden_size = 32
    latent_length = 16

    params = init_lambda_params(k_param, hidden_size, latent_length)
    cell_output = jax.random.normal(k_x, (batch, hidden_size), jnp.float32)
    # TODO(synk): torch.randn_like noise is generated outside the kernel for
    # deterministic reference checking (could use pltpu.prng_* in-kernel).
    eps = jax.random.normal(k_eps, (batch, latent_length), jnp.float32)

    # Training-mode forward (reparameterized sample).
    sample, mean, logvar = lambda_forward(cell_output, params,
                                          training=True, eps=eps)
    sample = jax.block_until_ready(sample)

    # Eval-mode forward (returns mean only; specialized kernel).
    out_eval = lambda_forward(cell_output, params, training=False)
    out_eval = jax.block_until_ready(out_eval)

    # Reference check in plain JAX.
    ref_mean = cell_output @ params["wm"] + params["bm"]
    ref_logvar = cell_output @ params["wv"] + params["bv"]
    ref_sample = eps * jnp.exp(0.5 * ref_logvar) + ref_mean
    assert jnp.allclose(mean, ref_mean, atol=1e-5, rtol=1e-5)
    assert jnp.allclose(logvar, ref_logvar, atol=1e-5, rtol=1e-5)
    assert jnp.allclose(sample, ref_sample, atol=1e-5, rtol=1e-5)
    assert jnp.allclose(out_eval, ref_mean, atol=1e-5, rtol=1e-5)

    print("KERNEL_OK")
</pallas_src>

<mosaic_0001>
module attributes {stable_mosaic.version = 11 : i64} {
  func.func @_lambda_train_kernel(%arg0: i32, %arg1: memref<8x32xf32, #tpu.memory_space<vmem>>, %arg2: memref<32x32xf32, #tpu.memory_space<vmem>>, %arg3: memref<1x32xf32, #tpu.memory_space<vmem>>, %arg4: memref<8x16xf32, #tpu.memory_space<vmem>>, %arg5: memref<8x48xf32, #tpu.memory_space<vmem>>) attributes {dimension_semantics = [#tpu.dimension_semantics<parallel>], iteration_bounds = array<i64: 1>, scalar_prefetch = 0 : i64, scratch_operands = 0 : i64, tpu.core_type = #tpu.core_type<tc>, window_params = [{transform_indices = @transform_0, window_bounds = array<i64: 8, 32>}, {pipeline_mode = #tpu.pipeline_mode<synchronous>, transform_indices = @transform_1, window_bounds = array<i64: 32, 32>}, {pipeline_mode = #tpu.pipeline_mode<synchronous>, transform_indices = @transform_2, window_bounds = array<i64: 1, 32>}, {transform_indices = @transform_3, window_bounds = array<i64: 8, 16>}, {transform_indices = @transform_4, window_bounds = array<i64: 8, 48>}]} {
    %c0 = arith.constant 0 : index
    %c0_0 = arith.constant 0 : index
    %0 = vector.load %arg1[%c0, %c0_0] : memref<8x32xf32, #tpu.memory_space<vmem>>, vector<8x32xf32>
    %c0_1 = arith.constant 0 : index
    %c0_2 = arith.constant 0 : index
    %1 = vector.load %arg2[%c0_1, %c0_2] : memref<32x32xf32, #tpu.memory_space<vmem>>, vector<32x32xf32>
    %cst = arith.constant dense<0.000000e+00> : vector<8x32xf32>
    %2 = tpu.matmul %0, %1, %cst {dimension_numbers = #tpu.dot_dimension_numbers<[1], [0], [0], [1], [0, 0, 1, 1], [], []>} : vector<8x32xf32>, vector<32x32xf32>, vector<8x32xf32> -> vector<8x32xf32>
    %c0_3 = arith.constant 0 : index
    %c0_4 = arith.constant 0 : index
    %3 = vector.load %arg3[%c0_3, %c0_4] : memref<1x32xf32, #tpu.memory_space<vmem>>, vector<1x32xf32>
    %4 = vector.broadcast %3 : vector<1x32xf32> to vector<8x32xf32>
    %5 = arith.addf %2, %4 : vector<8x32xf32>
    %6 = vector.extract_strided_slice %5 {offsets = [0, 0], sizes = [8, 16], strides = [1, 1]} : vector<8x32xf32> to vector<8x16xf32>
    %7 = vector.extract_strided_slice %5 {offsets = [0, 16], sizes = [8, 16], strides = [1, 1]} : vector<8x32xf32> to vector<8x16xf32>
    %cst_5 = arith.constant 5.000000e-01 : f32
    %8 = vector.broadcast %cst_5 : f32 to vector<8x16xf32>
    %9 = arith.mulf %8, %7 : vector<8x16xf32>
    %10 = math.exp %9 : vector<8x16xf32>
    %c0_6 = arith.constant 0 : index
    %c0_7 = arith.constant 0 : index
    %11 = vector.load %arg4[%c0_6, %c0_7] : memref<8x16xf32, #tpu.memory_space<vmem>>, vector<8x16xf32>
    %12 = arith.mulf %11, %10 : vector<8x16xf32>
    %13 = arith.addf %12, %6 : vector<8x16xf32>
    %c0_8 = arith.constant 0 : index
    %c0_9 = arith.constant 0 : index
    %14 = vector.load %arg5[%c0_8, %c0_9] : memref<8x48xf32, #tpu.memory_space<vmem>>, vector<8x32xf32>
    tpu.vector_store %arg5[%c0_8, %c0_9], %5 {strides = array<i32>} : memref<8x48xf32, #tpu.memory_space<vmem>>, vector<8x32xf32>,
    %c0_10 = arith.constant 0 : index
    %c32 = arith.constant 32 : index
    %15 = vector.load %arg5[%c0_10, %c32] : memref<8x48xf32, #tpu.memory_space<vmem>>, vector<8x16xf32>
    tpu.vector_store %arg5[%c0_10, %c32], %13 {strides = array<i32>} : memref<8x48xf32, #tpu.memory_space<vmem>>, vector<8x16xf32>,
    return
  }
  func.func @transform_0(%arg0: i32) -> (i32, i32) {
    %c0_i32 = arith.constant 0 : i32
    %c0_i32_0 = arith.constant 0 : i32
    return %arg0, %c0_i32 : i32, i32
  }
  func.func @transform_1(%arg0: i32) -> (i32, i32) {
    %c0_i32 = arith.constant 0 : i32
    %c0_i32_0 = arith.constant 0 : i32
    %c0_i32_1 = arith.constant 0 : i32
    return %c0_i32, %c0_i32_0 : i32, i32
  }
  func.func @transform_2(%arg0: i32) -> (i32, i32) {
    %c0_i32 = arith.constant 0 : i32
    %c0_i32_0 = arith.constant 0 : i32
    %c0_i32_1 = arith.constant 0 : i32
    return %c0_i32, %c0_i32_0 : i32, i32
  }
  func.func @transform_3(%arg0: i32) -> (i32, i32) {
    %c0_i32 = arith.constant 0 : i32
    %c0_i32_0 = arith.constant 0 : i32
    return %arg0, %c0_i32 : i32, i32
  }
  func.func @transform_4(%arg0: i32) -> (i32, i32) {
    %c0_i32 = arith.constant 0 : i32
    %c0_i32_0 = arith.constant 0 : i32
    return %arg0, %c0_i32 : i32, i32
  }
}

</mosaic_0001>

<bundles_post_ra>
// kernel: tpu_custom_call.1
= control target key start
LH: loop header
LB: loop body
LE: loop exit
PB: predicated region body
PF: predicated region fallthrough
CT: control target
= control target key end

     0   :  { %9 = vsyncpa [#allocation3], 0  ;;  %s355_s0 = inlined_call_operand.hbm [shape: f32[8,32], index: 0, kind: input, shape index: {}]   ;;  %s356_s1 = inlined_call_operand.hbm [shape: f32[32,32], index: 1, kind: input, shape index: {}]   ;;  %s357_s2 = inlined_call_operand.vmem [shape: f32[1,32], index: 2, kind: input, shape index: {}]   ;;  %s358_s3 = inlined_call_operand.vmem [shape: f32[8,16], index: 3, kind: input, shape index: {}]   ;;  %s359_s4 = inlined_call_operand.hbm [shape: f32[8,48], index: 4, kind: output, shape index: {}]  }
   0x1   :  { %10 = vsyncpa [#allocation6], 0 }
   0x2   :  { %11 = vsyncpa [#allocation4], 0  ;;  %s271_s15 = smov [#allocation2]   ;;  %s272_s17 = smov [#allocation5]  }
   0x3   :  { %s18_s16 = sshll.u32 %s271_s15, 4  ;;  %s27_s18 = sshll.u32 %s272_s17, 4  ;;  %s19_s16 = int_to_ptr.vmem [resolvable:$true] %s18_s16  ;;  %s306_s18 = int_to_ptr.vmem [resolvable:$true] %s27_s18 }
   0x4   :  { %s199_s21 = scalar_lea.hbm %s355_s0, 128 }
   0x5   :  { %p200_p0 = scmp.ne.s32.totalorder %s355_s0, %s199_s21  ;;  %p203_p1 = scmp.lt.u32.totalorder %s199_s21, %s355_s0 }
   0x7   :  { %p205_p2 = pnand %p203_p1, %p200_p0 }
   0x9   :  { %208 = shalt.err (!%p205_p2)
}
   0xa   :  { %s209_s26 = scalar_lea.vmem %s19_s16, 128  ;;  %p214_p4 = scmp.lt.s32.totalorder %s19_s16, %s19_s16 }
   0xb   :  { %p210_p3 = scmp.ne.s32.totalorder %s19_s16, %s209_s26  ;;  %p215_p5 = scmp.lt.s32.totalorder %s209_s26, %s209_s26 }
   0xd   :  { %p216_p6 = por %p215_p5, %p214_p4 }
   0xf   :  { %p217_p7 = pnand %p216_p6, %p210_p3 }
  0x11   :  { %220 = shalt.err (!%p217_p7)
}
  0x12   :  { %21 = dma.hbm_to_vmem [thread:$0]  %s355_s0, 128, %s19_s16, [#allocation3]  }
  0x13   :  { %s221_s5 = scalar_lea.hbm %s356_s1, 512 }
  0x14   :  { %p222_p8 = scmp.ne.s32.totalorder %s356_s1, %s221_s5  ;;  %p225_p9 = scmp.lt.u32.totalorder %s221_s5, %s356_s1 }
  0x16   :  { %p227_p10 = pnand %p225_p9, %p222_p8 }
  0x18   :  { %230 = shalt.err (!%p227_p10)
}
  0x19   :  { %s231_s10 = scalar_lea.vmem %s306_s18, 512  ;;  %p236_p12 = scmp.lt.s32.totalorder %s306_s18, %s306_s18 }
  0x1a   :  { %p232_p11 = scmp.ne.s32.totalorder %s306_s18, %s231_s10  ;;  %p237_p13 = scmp.lt.s32.totalorder %s231_s10, %s231_s10 }
  0x1c   :  { %p238_p0 = por %p237_p13, %p236_p12 }
  0x1e   :  { %p239_p1 = pnand %p238_p0, %p232_p11 }
  0x20   :  { %242 = shalt.err (!%p239_p1)
}
  0x21   :  { %s273_s0 = smov 128   ;;  %s274_s11 = smov 8  }
  0x22   :  { %33 = dma.hbm_to_vmem [thread:$0]  %s356_s1, 512, %s306_s18, [#allocation6], %s273_s0, %s273_s0, %s274_s11  }
  0x23   :  { %265 = dma.done.wait [#allocation3], 128  }
  0x24   :  { %266 = vsyncadd [#allocation3], 4294967168 }
  0x25   :  { %267 = dma.done.wait [#allocation6], 512  }
  0x26   :  { %268 = vsyncadd [#allocation6], 4294966784  ;;  %v275_v0 = vmov 0.0|0.0   ;;  %vm276_vm0 = vmmov 0   ;;  %v277_v1 = vmov 0.0   ;;  %v45_v2 = vld [vmem:[#allocation5] sm:$0xff] }
  0x27   :  { %181 = vmatprep.subr.bf16.mxu0 %v275_v0  ;;  %178 = vmatprep.mubr.msk.f32.mxu0 %vm276_vm0, %v277_v1  ;;  %v46_v3 = vld [vmem:[#allocation5 + $0x8] sm:$0xff]  ;;  %v47_v4 = vld [vmem:[#allocation5 + $0x10] sm:$0xff]  ;;  %v48_v6 = vld [vmem:[#allocation5 + $0x18] sm:$0xff]  ;;  %vm56_vm1 = vcmask 261120   ;;  %s278_s15 = smov 112   ;;  %s279_s18 = smov 32  }
  0x28   :  { %v182_v5 = vpack.c.bf16 %v46_v3, %v45_v2  ;;  %v185_v7 = vpack.c.bf16 %v48_v6, %v47_v4  ;;  %v44_v8 = vld [vmem:[#allocation2] sm:$0xff]  ;;  %vm145_vm2 = vcmask 392448  }
  0x29   :  { %v163_v9 = vld [vmem:[%s357_s2] ss:$0 sm:$0xff]  ;;  %s280_s2 = smov [#allocation7]  }
  0x2a   :  { %183 = vmatpush3.bf16.msra.mxu0 %v182_v5  ;;  %v133_v16 = vld [vmem:[%s358_s3] sm:$0xff]  ;;  %s153_s19 = sshll.u32 %s280_s2, 4  ;;  %s154_s19 = int_to_ptr.vmem [resolvable:$true] %s153_s19 }
  0x2b   :  { %184 = vmatprep.subr.bf16.mxu0 %v275_v0  ;;  %s243_s20 = scalar_lea.vmem %s154_s19, 128  ;;  %p248_p3 = scmp.lt.s32.totalorder %s154_s19, %s154_s19 }
  0x2c   :  { %p244_p2 = scmp.ne.s32.totalorder %s154_s19, %s243_s20  ;;  %p249_p4 = scmp.lt.s32.totalorder %s243_s20, %s243_s20 }
  0x2e   :  { %186 = vmatpush3.bf16.msra.mxu0 %v185_v7  ;;  %p250_p5 = por %p249_p4, %p248_p3 }
  0x30   :  { %p251_p6 = pnand %p250_p5, %p244_p2 }
  0x31   :  { %179 = vmatmul.mubr.msk.f32.vlgmr.msra.gmra.mrb[0].mxu0 %vm56_vm1, %v44_v8 }
 0x104   :  { %v126_v10 = vpop.f32.mrb[0].mxu0 }
 0x105   :  { %v127_v11 = vadd.f32 %v163_v9, %v126_v10  ;;  %v180_v12 = vpop.f32.mrb[1].mxu0 }
 0x107   :  { %v130_v13 = vmul.f32 0.5, %v127_v11  ;;  %140 = vst.msk [vmem:[#allocation7] sm:$0xff] %vm56_vm1, %v127_v11 }
 0x109   :  { %v131_v14 = vmul.f32 1.442695, %v130_v13 }
 0x10b   :  { %197 = vpow2.f32 %v131_v14 }
 0x115   :  { %v198_v15 = vpop.eup %197 }
 0x116   :  { %135 = vrot.lane.b32.xlu0 %v198_v15, %s278_s15 }
 0x188   :  { %v136_v17 = vpop.permute.xlu0 %135 }
 0x189   :  { %v138_v18 = vmul.f32 %v136_v17, %v133_v16 }
 0x18b   :  { %v139_v19 = vadd.f32 %v138_v18, %v127_v11 }
 0x18d   :  { %142 = vrot.lane.b32.xlu0 %v139_v19, %s279_s18 }
 0x1ff   :  { %v143_v20 = vpop.permute.xlu0 %142 }
 0x200   :  { %146 = vst.msk [vmem:[#allocation7] sm:$0xff] %vm145_vm2, %v143_v20 }
 0x201   :  { %254 = shalt.err (!%p251_p6)
}
 0x202   :  { %s255_s22 = scalar_lea.hbm %s359_s4, 128 }
 0x203   :  { %p256_p7 = scmp.ne.s32.totalorder %s359_s4, %s255_s22  ;;  %p259_p8 = scmp.lt.u32.totalorder %s255_s22, %s359_s4 }
 0x205   :  { %p261_p9 = pnand %p259_p8, %p256_p7 }
 0x207   :  { %264 = shalt.err (!%p261_p9)
}
 0x208   :  { %156 = dma.vmem_to_hbm [thread:$0]  %s154_s19, 128, %s359_s4, [#allocation4]  }
 0x209   :  { %269 = dma.done.wait [#allocation4], 128  }
 0x20a   :  { %270 = vsyncadd [#allocation4], 4294967168 }
 0x20b   :  { %160 = vsyncpa [#allocation3], 1 }
 0x20c   :  { %161 = vsyncpa [#allocation6], 1 }
 0x20d   :  { %162 = vsyncpa [#allocation4], 1 }

</bundles_post_ra>
